<compile_context>
chip_gen: v5e
topology: v5e:2x2
jax: 0.10.0
libtpu: 0.0.40
codegen_flags: <defaults>
</compile_context>

<pallas_src>
from functools import lru_cache

import numpy as np
import jax
import jax.numpy as jnp
from jax.experimental import pallas as pl
from jax.experimental.pallas import tpu as pltpu


# ----------------------------------------------------------------------------
# Folded operator construction (deterministic, data-independent, cached).
# ----------------------------------------------------------------------------
def _round_up(v, m):
    return ((v + m - 1) // m) * m


def _hard_mask_vec(t, wid):
    # hard_mask(t, wid, normalized=True) collapsed to its per-row weight vector.
    ran = np.arange(wid, dtype=np.float32) - (wid - 1) / 2.0
    m = (np.abs(ran) < t).astype(np.float32)
    return m / m.sum()


def _build_folded_operator_np(theta_deg, W, m0, m1):
    """C[p*W+q, t*2W + ch*W + c] = sum_r mask_ch[r] * w_{(r,c)->(p,q)}(theta_t),
    where w are the bilinear grid_sample weights (align_corners=False, zeros)."""
    T = len(theta_deg)
    th = np.deg2rad(np.asarray(theta_deg, dtype=np.float32))
    cos = np.cos(th).astype(np.float32)[:, None, None]
    sin = np.sin(th).astype(np.float32)[:, None, None]

    base = (2.0 * np.arange(W, dtype=np.float32) + 1.0) / W - 1.0
    X = base[None, None, :]                    # output column coordinate
    Y = base[None, :, None]                    # output row coordinate
    gx = cos * X + sin * Y                     # (T, W, W) sample x (col) in [-1,1]
    gy = -sin * X + cos * Y                    # (T, W, W) sample y (row)

    ix = ((gx + 1.0) * W - 1.0) * 0.5          # unnormalize (align_corners=False)
    iy = ((gy + 1.0) * W - 1.0) * 0.5
    ix0 = np.floor(ix); iy0 = np.floor(iy)
    ix1 = ix0 + 1.0;    iy1 = iy0 + 1.0
    wx1 = ix - ix0; wx0 = 1.0 - wx1
    wy1 = iy - iy0; wy0 = 1.0 - wy1

    C = np.zeros((W * W, T, 2, W), np.float32)
    t_idx = np.broadcast_to(np.arange(T)[:, None, None], (T, W, W))
    c_idx = np.broadcast_to(np.arange(W)[None, None, :], (T, W, W))
    m0_r = np.broadcast_to(m0[None, :, None], (T, W, W))   # mask over output rows
    m1_r = np.broadcast_to(m1[None, :, None], (T, W, W))

    def scatter(iyc, ixc, w):
        valid = (iyc >= 0) & (iyc <= W - 1) & (ixc >= 0) & (ixc <= W - 1)
        pq = (np.clip(iyc, 0, W - 1).astype(np.int64) * W
              + np.clip(ixc, 0, W - 1).astype(np.int64))
        wv = np.where(valid, w, 0.0).astype(np.float32)
        np.add.at(C, (pq, t_idx, 0, c_idx), wv * m0_r)
        np.add.at(C, (pq, t_idx, 1, c_idx), wv * m1_r)

    scatter(iy0, ix0, wy0 * wx0)
    scatter(iy0, ix1, wy0 * wx1)
    scatter(iy1, ix0, wy1 * wx0)
    scatter(iy1, ix1, wy1 * wx1)
    return C.reshape(W * W, T * 2 * W)


@lru_cache(maxsize=None)
def _folded_operator(theta_key, W, steps, index, geometric, dtype_name):
    """Returns the folded operator, zero-padded to 128-multiples, in op dtype."""
    theta_deg = np.asarray(theta_key, dtype=np.float32)
    if geometric:
        segments = np.logspace(np.log10(1), np.log10(W / 2), num=steps + 1, dtype=int)
    else:
        segments = np.linspace(1, W / 2, steps + 1, dtype=int)
    # NOTE: `4 - index` (not `steps - index`) mirrors the hard-coded constant in
    # the reference module's forward().  Guard against silent out-of-range use.
    assert 0 <= 4 - index <= steps, (
        "reference module hard-codes segments[4 - index]; got index=%d steps=%d"
        % (index, steps))
    m0 = _hard_mask_vec(float(segments[4 - index]), W)   # output channel 0
    m1 = _hard_mask_vec(float(segments[-1]), W)          # output channel 1
    C = _build_folded_operator_np(theta_deg, W, m0, m1)  # (K, L) float32
    K, L = C.shape
    Kpad, Lpad = _round_up(K, 128), _round_up(L, 128)
    if (Kpad, Lpad) != (K, L):
        Cp = np.zeros((Kpad, Lpad), np.float32)
        Cp[:K, :L] = C
        C = Cp
    return jnp.asarray(C).astype(np.dtype(dtype_name))


def _pick_tile_128(total, max_tile):
    """Largest multiple-of-128 divisor of `total` (itself a 128-multiple)
    that is <= max_tile; always >= 128 (no full-axis fallback)."""
    assert total % 128 == 0
    cap = max(128, min(max_tile, total))
    t = (cap // 128) * 128
    while t > 128:
        if total % t == 0:
            return t
        t -= 128
    return 128


def _vmem_limit(est_bytes):
    # 2x headroom for Mosaic internal scratch, capped at 48 MiB (v7x budget).
    return int(min(max(2 * est_bytes, 16 << 20), 48 << 20))


# ----------------------------------------------------------------------------
# Pallas kernels: out = x_flat @ C (bf16 operands, f32 accumulation).
# ----------------------------------------------------------------------------
def _radon_noacc_kernel(x_ref, c_ref, o_ref):
    # nk == 1: single reduction block, write the output tile directly.
    o_ref[...] = jnp.dot(x_ref[...], c_ref[...],
                         preferred_element_type=jnp.float32)


def _radon_tiled_acc_kernel(x_ref, c_ref, o_ref, acc_ref):
    # x streamed per (j, k) tile.
    k = pl.program_id(1)

    @pl.when(k == 0)
    def _():
        acc_ref[...] = jnp.zeros_like(acc_ref)

    acc_ref[...] += jnp.dot(x_ref[...], c_ref[...],
                            preferred_element_type=jnp.float32)

    @pl.when(k == pl.num_programs(1) - 1)
    def _():
        o_ref[...] = acc_ref[...]


def _make_resident_acc_kernel(tk):
    # x fully resident in VMEM (constant block index); slice the k-chunk here.
    def kernel(x_ref, c_ref, o_ref, acc_ref):
        k = pl.program_id(1)

        @pl.when(k == 0)
        def _():
            acc_ref[...] = jnp.zeros_like(acc_ref)

        start = pl.multiple_of(k * tk, tk)
        acc_ref[...] += jnp.dot(x_ref[:, pl.ds(start, tk)], c_ref[...],
                                preferred_element_type=jnp.float32)

        @pl.when(k == pl.num_programs(1) - 1)
        def _():
            o_ref[...] = acc_ref[...]

    return kernel


# ----------------------------------------------------------------------------
# Wrapper.
# ----------------------------------------------------------------------------
def partial_radon_step_end(x, index, theta_deg=None, steps=4, circle=True,
                           geometric=False, op_dtype=jnp.bfloat16,
                           max_tk=2048, max_tn=2048):
    """Equivalent of PartialRadonStepEnd(theta=theta_deg, steps=steps,
    circle=True, geometric=geometric).forward(x, index).
    Returns (N, 2, W, len(theta)) float32.

    Note: the kernel is HBM-bound on the folded-operator stream (arithmetic
    intensity ~N flops/byte) — batching more images per call is near-free."""
    if theta_deg is None:
        theta_deg = np.arange(180.0)
    if not circle:
        # TODO(synk): circle=False sqrt(2)-padding path not implemented.
        raise NotImplementedError("circle=False is not implemented")

    N, C_in, W, H = x.shape
    assert C_in == 1 and W == H
    T = len(theta_deg)
    K = W * W
    L = T * 2 * W
    op_bytes = np.dtype(op_dtype).itemsize

    Cop = _folded_operator(tuple(float(t) for t in np.asarray(theta_deg)),
                           int(W), int(steps), int(index), bool(geometric),
                           np.dtype(op_dtype).name)          # (Kpad, Lpad)
    Kpad, Lpad = Cop.shape

    # bf16 x (matched MXU operands; accuracy already bounded by bf16 operator),
    # padded to (Npad multiple of 8, Kpad multiple of 128) for unmasked stores.
    Npad = max(_round_up(N, 8), 8)
    x_flat = x.reshape(N, K).astype(jnp.bfloat16)
    if (Npad, Kpad) != (N, K):
        x_flat = jnp.pad(x_flat, ((0, Npad - N), (0, Kpad - K)))

    tk = _pick_tile_128(Kpad, max_tk)                 # reduction (pixel) tile
    # Force >= 2 lane blocks when possible so the "parallel" axis can split
    # across the two v7x TensorCores.
    eff_max_tn = min(max_tn, Lpad // 2) if Lpad >= 256 else max_tn
    tn = _pick_tile_128(Lpad, eff_max_tn)             # lane (angle*ch*col) tile
    nk = Kpad // tk
    nj = Lpad // tn

    x_bytes = Npad * Kpad * 2
    x_resident = x_bytes <= (8 << 20)

    cost = pl.CostEstimate(
        flops=2 * Npad * Kpad * Lpad,
        transcendentals=0,
        bytes_accessed=Npad * Kpad * 2 + Kpad * Lpad * op_bytes + Npad * Lpad * 4,
    )

    if nk == 1 and x_resident:
        # Single reduction block: no accumulator scratch, direct store.
        est = 2 * Kpad * tn * op_bytes + 2 * Npad * tn * 4 + 2 * x_bytes
        out = pl.pallas_call(
            _radon_noacc_kernel,
            out_shape=jax.ShapeDtypeStruct((Npad, Lpad), jnp.float32),
            grid_spec=pltpu.PrefetchScalarGridSpec(
                num_scalar_prefetch=0,
                grid=(nj,),
                in_specs=[
                    pl.BlockSpec((Npad, Kpad), lambda j: (0, 0)),   # x, resident
                    pl.BlockSpec((Kpad, tn), lambda j: (0, j)),     # C stream
                ],
                out_specs=pl.BlockSpec((Npad, tn), lambda j: (0, j)),
            ),
            compiler_params=pltpu.CompilerParams(
                dimension_semantics=("parallel",),
                vmem_limit_bytes=_vmem_limit(est)),
            cost_estimate=cost,
        )(x_flat, Cop)
    else:
        if x_resident:
            kernel = _make_resident_acc_kernel(tk)
            x_spec = pl.BlockSpec((Npad, Kpad), lambda j, k: (0, 0))
            x_buf_bytes = 2 * x_bytes
        else:
            kernel = _radon_tiled_acc_kernel
            x_spec = pl.BlockSpec((Npad, tk), lambda j, k: (0, k))
            x_buf_bytes = 2 * Npad * tk * 2
        est = 2 * tk * tn * op_bytes + 3 * Npad * tn * 4 + x_buf_bytes
        out = pl.pallas_call(
            kernel,
            out_shape=jax.ShapeDtypeStruct((Npad, Lpad), jnp.float32),
            grid_spec=pltpu.PrefetchScalarGridSpec(
                num_scalar_prefetch=0,
                grid=(nj, nk),                                      # reduction last
                in_specs=[
                    x_spec,
                    pl.BlockSpec((tk, tn), lambda j, k: (k, j)),    # C stream
                ],
                out_specs=pl.BlockSpec((Npad, tn), lambda j, k: (0, j)),
                scratch_shapes=[pltpu.VMEM((Npad, tn), jnp.float32)],
            ),
            compiler_params=pltpu.CompilerParams(
                dimension_semantics=("parallel", "arbitrary"),
                vmem_limit_bytes=_vmem_limit(est)),
            cost_estimate=cost,
        )(x_flat, Cop)

    out = out[:N, :L]
    # (N, T*2W) -> (N, T, 2, W) -> (N, 2, W, T): matches torch.zeros(N, 2, W, T).
    return jnp.transpose(out.reshape(N, T, 2, W), (0, 2, 3, 1))


# ----------------------------------------------------------------------------
if __name__ == "__main__":
    key = jax.random.PRNGKey(0)
    N, W = 2, 16
    theta_deg = np.arange(0.0, 180.0, 22.5)   # 8 angles (module default is arange(180))
    steps, index = 4, 2

    x = jax.random.normal(key, (N, 1, W, W), dtype=jnp.float32)

    out = jax.block_until_ready(
        partial_radon_step_end(x, index, theta_deg, steps=steps))
    assert out.shape == (N, 2, W, len(theta_deg))
    assert out.dtype == jnp.float32

    T = len(theta_deg)
    K, L = W * W, T * 2 * W
    theta_key = tuple(float(t) for t in theta_deg)

    # Reference 1: plain-JAX matmul with the same bf16 x and bf16 folded operator.
    Cq = _folded_operator(theta_key, W, steps, index, False,
                          np.dtype(jnp.bfloat16).name)[:K, :L].astype(jnp.float32)
    x_bf = x.reshape(N, K).astype(jnp.bfloat16).astype(jnp.float32)
    ref_q = jnp.transpose((x_bf @ Cq).reshape(N, T, 2, W), (0, 2, 3, 1))
    assert jnp.allclose(out, ref_q, atol=1e-2, rtol=1e-2)

    # Reference 2 (loose): full-f32 folded operator + f32 x = module-exact math.
    Cf = _folded_operator(theta_key, W, steps, index, False, "float32")[:K, :L]
    ref_f = jnp.transpose((x.reshape(N, K) @ Cf).reshape(N, T, 2, W), (0, 2, 3, 1))
    assert jnp.allclose(out, ref_f, atol=5e-2, rtol=5e-2)

    # Semantic sanity: at theta=0 the rotation is the identity, so channel 1
    # (full-width normalized mask) is the column-wise mean over rows.
    assert jnp.allclose(out[:, 1, :, 0], x[:, 0].mean(axis=1), atol=1e-2)

    print("KERNEL_OK")
</pallas_src>

<mosaic_0001>
module attributes {stable_mosaic.version = 11 : i64} {
  func.func @_radon_noacc_kernel(%arg0: i32, %arg1: memref<8x256xbf16, #tpu.memory_space<vmem>>, %arg2: memref<256x128xbf16, #tpu.memory_space<vmem>>, %arg3: memref<8x128xf32, #tpu.memory_space<vmem>>) attributes {dimension_semantics = [#tpu.dimension_semantics<parallel>], iteration_bounds = array<i64: 2>, scalar_prefetch = 0 : i64, scratch_operands = 0 : i64, tpu.core_type = #tpu.core_type<tc>, window_params = [{pipeline_mode = #tpu.pipeline_mode<synchronous>, transform_indices = @transform_0, window_bounds = array<i64: 8, 256>}, {transform_indices = @transform_1, window_bounds = array<i64: 256, 128>}, {transform_indices = @transform_2, window_bounds = array<i64: 8, 128>}]} {
    %c0 = arith.constant 0 : index
    %c0_0 = arith.constant 0 : index
    %0 = vector.load %arg1[%c0, %c0_0] : memref<8x256xbf16, #tpu.memory_space<vmem>>, vector<8x256xbf16>
    %c0_1 = arith.constant 0 : index
    %c0_2 = arith.constant 0 : index
    %1 = vector.load %arg2[%c0_1, %c0_2] : memref<256x128xbf16, #tpu.memory_space<vmem>>, vector<256x128xbf16>
    %cst = arith.constant dense<0.000000e+00> : vector<8x128xf32>
    %2 = tpu.matmul %0, %1, %cst {dimension_numbers = #tpu.dot_dimension_numbers<[1], [0], [0], [1], [0, 0, 1, 1], [], []>} : vector<8x256xbf16>, vector<256x128xbf16>, vector<8x128xf32> -> vector<8x128xf32>
    %c0_3 = arith.constant 0 : index
    %c0_4 = arith.constant 0 : index
    %3 = vector.load %arg3[%c0_3, %c0_4] : memref<8x128xf32, #tpu.memory_space<vmem>>, vector<8x128xf32>
    tpu.vector_store %arg3[%c0_3, %c0_4], %2 {strides = array<i32>} : memref<8x128xf32, #tpu.memory_space<vmem>>, vector<8x128xf32>,
    return
  }
  func.func @transform_0(%arg0: i32) -> (i32, i32) {
    %c0_i32 = arith.constant 0 : i32
    %c0_i32_0 = arith.constant 0 : i32
    %c0_i32_1 = arith.constant 0 : i32
    return %c0_i32, %c0_i32_0 : i32, i32
  }
  func.func @transform_1(%arg0: i32) -> (i32, i32) {
    %c0_i32 = arith.constant 0 : i32
    %c0_i32_0 = arith.constant 0 : i32
    return %c0_i32, %arg0 : i32, i32
  }
  func.func @transform_2(%arg0: i32) -> (i32, i32) {
    %c0_i32 = arith.constant 0 : i32
    %c0_i32_0 = arith.constant 0 : i32
    return %c0_i32, %arg0 : i32, i32
  }
}

</mosaic_0001>

<bundles_post_ra>
// kernel: tpu_custom_call.1
= control target key start
LH: loop header
LB: loop body
LE: loop exit
PB: predicated region body
PF: predicated region fallthrough
CT: control target
= control target key end

     0   :  { %7 = vsyncpa [#allocation3], 0  ;;  %s905_s0 = inlined_call_operand.hbm [shape: bf16[8,256], index: 0, kind: input, shape index: {}]   ;;  %s906_s1 = inlined_call_operand.hbm [shape: bf16[256,256], index: 1, kind: input, shape index: {}]   ;;  %s907_s2 = inlined_call_operand.hbm [shape: f32[8,256], index: 2, kind: output, shape index: {}]  }
   0x1   :  { %8 = vsyncpa [#allocation6], 0 }
   0x2   :  { %10 = vsyncpa [#allocation6 + $0x1], 0 }
   0x3   :  { %11 = vsyncpa [#allocation4], 0 }
   0x4   :  { %13 = vsyncpa [#allocation4 + $0x1], 0  ;;  %s744_s9 = smov 0   ;;  %s746_s10 = smov 0  }
   0x5   :  { %s748_s11 = smov 0   ;;  %s750_s12 = smov 0  }
   0x6 LB: > { %s765_s13 = sadd.s32 4294967295, %s723_s12   ;;  %s439_s14 = sadd.s32 4294967294, %s723_s12   ;;  %s723_s12 = sphi %s750_s12, %s918_s12   ;;  %s719_s11 = sphi %s748_s11, %s917_s11   ;;  %s715_s10 = sphi %s746_s10, %s916_s10   ;;  %s711_s9 = sphi %s744_s9, %s915_s9  }
   0x7   : > { %s769_s15 = sadd.s32 1, %s723_s12   ;;  %s47_s16 = sadd.s32 1, %s719_s11 }
   0x8   : > { %s44_s17 = ssub.s32 %s723_s12, %s769_s15  ;;  %p54_p0 = scmp.ne.s32.totalorder %s719_s11, %s715_s10 }
   0x9   : > { %p45_p1 = scmp.eq.s32.totalorder %s44_s17, 0  ;;  %p55_p2 = scmp.eq.s32.totalorder %s723_s12, 0 }
   0xa   : > { %p60_p3 = scmp.ne.s32.totalorder %s715_s10, %s711_s9  ;;  %p61_p4 = scmp.eq.s32.totalorder %s765_s13, 0 }
   0xb   : > { %s781_s18 = scalar_select %p45_p1, %s719_s11, %s47_s16  }
   0xc   : > { %p783_p5 = por %p55_p2, %p54_p0  ;;  %p789_p6 = por %p61_p4, %p60_p3 }
   0xd   : > { %p84_p7 = scmp.eq.s32.totalorder %s765_s13, 1  ;;  %p90_p8 = scmp.eq.s32.totalorder %s439_s14, 1 }
   0xe   : > { %p440_p9 = scmp.ge.s32.totalorder %s723_s12, 1  ;;  %p97_p10 = scmp.lt.s32.totalorder %s723_s12, 3 }
   0xf   : > { %p796_p11 = por %p84_p7, %p54_p0  ;;  %p800_p12 = por %p90_p8, %p60_p3 }
  0x10   : > { %p804_p13 = pnand %p440_p9, %p97_p10  ;;  %s109_s26 = sshll.u32 %s905_s0, 4  ;;  %s110_s26 = int_to_ptr.hbm [resolvable:$true] %s109_s26 }
  0x11   : > { %s725_s27 = smov [#allocation2]   ;;  %p554_p3 = scmp.lt.s32.totalorder %s723_s12, 2 }
  0x12   : > { %p541_p1 = pneg %p804_p13  ;;  %s111_s28 = sshll.u32 %s725_s27, 4  ;;  %s112_s28 = int_to_ptr.vmem [resolvable:$true] %s111_s28 }
  0x13   : > { %s122_s29 = sand.u32 1, %s719_s11   ;;  %p820_p7 = pnand %p554_p3, %p783_p5 }
  0x14   : > { %p542_p2 = pnand %p541_p1, %p61_p4  ;;  %s443_s3 = sshll.u32 %s122_s29, 7 }
  0x15   : > { %s444_s4 = sshll.u32 %s723_s12, 2  ;;  %s126_s14 = scalar_lea.vmem [#allocation5], %s443_s3 }
  0x16   : > { %544 = dma.hbm_to_vmem [thread:$0]  (!%p542_p2), %s110_s26, 128, %s112_s28, [#allocation3]  }
  0x17   : > { %s130_s7 = scalar_lea.hbm %s906_s1, %s444_s4  ;;  %s133_s16 = sshll.u32 %s126_s14, 4  ;;  %s134_s16 = int_to_ptr.vmem [resolvable:$true] %s133_s16 }
  0x18   : > { %s131_s8 = sshll.u32 %s130_s7, 4  ;;  %s123_s17 = scalar_lea.sflag [#allocation6], %s122_s29  ;;  %s132_s8 = int_to_ptr.hbm [resolvable:$true] %s131_s8 }
  0x19   : > { %s623_s24 = sshra.s32 %s132_s8, 4  ;;  %p627_p8 = pneg %p820_p7  ;;  %s624_s24 = int_to_ptr.hbm [resolvable:$true] %s623_s24 }
  0x1a   : > { %s625_s19 = scalar_lea.hbm %s624_s24, 128  ;;  %s630_s27 = scalar_lea.hbm %s906_s1, 256 }
  0x1b   : > { %p626_p5 = scmp.ne.s32.totalorder %s624_s24, %s625_s19  ;;  %p631_p1 = scmp.lt.s32.totalorder %s624_s24, %s906_s1 }
  0x1c   : > { %p632_p2 = scmp.lt.s32.totalorder %s630_s27, %s625_s19 }
  0x1d   : > { %p628_p9 = pnand %p627_p8, %p626_p5 }
  0x1e   : > { %p633_p3 = por %p632_p2, %p631_p1 }
  0x1f   : > { %p629_p10 = pneg %p628_p9 }
  0x21   : > { %p634_p0 = pnand %p633_p3, %p629_p10 }
  0x23   : > { %637 = shalt.err (!%p634_p0)
}
  0x24   : > { %s726_s29 = smov 128   ;;  %s727_s3 = smov 64  }
  0x25   : > { %s728_s5 = smov 4   ;;  %145 = sbr.rel (%p804_p13) target bundleno = 214 (0xd6), region = 28 }
  0x26   : > { %548 = dma.hbm_to_vmem [thread:$0]  (!%p820_p7), %s132_s8, 2048, %s134_s16, %s123_s17, %s726_s29, %s727_s3, %s728_s5  }
  0x2a   : > { %698 = dma.done.wait (%p61_p4), [#allocation3], 128  }
  0x2b   : > { %700 = vsyncadd (%p61_p4), [#allocation3], 4294967168  ;;  %s845_s6 = sand.u32 1, %s715_s10  }
  0x2c   : > { %s447_s7 = sshll.u32 %s845_s6, 7  ;;  %s153_s14 = scalar_lea.sflag [#allocation6], %s845_s6 }
  0x2d   : > { %s849_s24 = scalar_lea.vmem [#allocation5], %s447_s7 }
  0x2e   : > { %702 = dma.done.wait (%p789_p6), %s153_s14, 2048  }
  0x2f   : > { %704 = vsyncadd (%p789_p6), %s153_s14, 4294965248  ;;  %v524_v0 = vld [vmem:[%s849_s24 + $0x38] sm:$0xff]  ;;  %v523_v2 = vld [vmem:[%s849_s24 + $0x30] sm:$0xff]  ;;  %s514_s20 = sshll.u32 %s765_s13, 3  ;;  %s448_s23 = sshll.u32 %s845_s6, 3 }
  0x30   : > { %v532_v1 = vld [vmem:[%s849_s24 + $0x78] sm:$0xff]  ;;  %314 = vmatpush.bf16.msra.mxu0 %v524_v0  ;;  %v531_v3 = vld [vmem:[%s849_s24 + $0x70] sm:$0xff]  ;;  %v522_v4 = vld [vmem:[%s849_s24 + $0x28] sm:$0xff]  ;;  %s352_s16 = scalar_lea.hbm %s907_s2, %s514_s20  ;;  %s177_s17 = scalar_lea.vmem [#allocation7], %s448_s23 }
  0x31   : > { %327 = vmatpush.bf16.msra.mxu1 %v532_v1  ;;  %v530_v5 = vld [vmem:[%s849_s24 + $0x68] sm:$0xff]  ;;  %v521_v6 = vld [vmem:[%s849_s24 + $0x20] sm:$0xff]  ;;  %v520_v8 = vld [vmem:[%s849_s24 + $0x18] sm:$0xff]  ;;  %s354_s19 = sshll.u32 %s177_s17, 4  ;;  %s356_s25 = sshll.u32 %s352_s16, 4  ;;  %s355_s19 = int_to_ptr.vmem [resolvable:$true] %s354_s19  ;;  %s357_s25 = int_to_ptr.hbm [resolvable:$true] %s356_s25 }
  0x32   : > { %v529_v7 = vld [vmem:[%s849_s24 + $0x60] sm:$0xff]  ;;  %v528_v9 = vld [vmem:[%s849_s24 + $0x58] sm:$0xff]  ;;  %v519_v10 = vld [vmem:[%s849_s24 + $0x10] sm:$0xff]  ;;  %s342_s26 = scalar_lea.sflag [#allocation4], %s845_s6  ;;  %s667_s27 = sshra.s32 %s357_s25, 4  ;;  %s668_s27 = int_to_ptr.hbm [resolvable:$true] %s667_s27 }
  0x33   : > { %v527_v11 = vld [vmem:[%s849_s24 + $0x50] sm:$0xff]  ;;  %v518_v12 = vld [vmem:[%s849_s24 + $0x8] sm:$0xff]  ;;  %v178_v14 = vld [vmem:[#allocation2] sm:$0xff]  ;;  %s669_s28 = scalar_lea.hbm %s668_s27, 8  ;;  %s673_s29 = scalar_lea.hbm %s907_s2, 16 }
  0x34   : > { %315 = vmatpush.bf16.msra.mxu0 %v523_v2  ;;  %v526_v13 = vld [vmem:[%s849_s24 + $0x48] sm:$0xff]  ;;  %v212_v15 = vunpack.c.l.b16 %v178_v14  ;;  %v213_v16 = vunpack.c.h.b16 %v178_v14  ;;  %v517_v17 = vld [vmem:[%s849_s24] sm:$0xff]  ;;  %p670_p4 = scmp.ne.s32.totalorder %s668_s27, %s669_s28  ;;  %p674_p0 = scmp.lt.s32.totalorder %s668_s27, %s907_s2 }
  0x35   : > { %328 = vmatpush.bf16.msra.mxu1 %v531_v3  ;;  %v525_v18 = vld [vmem:[%s849_s24 + $0x40] sm:$0xff]  ;;  %p675_p7 = scmp.lt.s32.totalorder %s673_s29, %s669_s28 }
  0x36   : > { %v214_v19 = vpack.c.b16 %v212_v15, %v212_v15  ;;  %v215_v20 = vpack.c.b16 %v213_v16, %v213_v16  ;;  %p671_p6 = pnand %p670_p4, %p796_p11 }
  0x37   : > { %p676_p5 = por %p675_p7, %p674_p0 }
  0x38   : > { %316 = vmatpush.bf16.msra.mxu0 %v522_v4  ;;  %p672_p13 = pneg %p671_p6 }
  0x39   : > { %329 = vmatpush.bf16.msra.mxu1 %v530_v5 }
  0x3a   : > { %p677_p8 = pnand %p676_p5, %p672_p13 }
  0x3c   : > { %317 = vmatpush.bf16.msra.mxu0 %v521_v6 }
  0x3d   : > { %330 = vmatpush.bf16.msra.mxu1 %v529_v7 }
  0x40   : > { %318 = vmatpush.bf16.msra.mxu0 %v520_v8 }
  0x41   : > { %331 = vmatpush.bf16.msra.mxu1 %v528_v9 }
  0x44   : > { %319 = vmatpush.bf16.msra.mxu0 %v519_v10 }
  0x45   : > { %332 = vmatpush.bf16.msra.mxu1 %v527_v11 }
  0x48   : > { %320 = vmatpush.bf16.msra.mxu0 %v518_v12 }
  0x49   : > { %333 = vmatpush.bf16.msra.mxu1 %v526_v13 }
  0x4c   : > { %321 = vmatpush.bf16.msra.mxu0 %v517_v17 }
  0x4d   : > { %334 = vmatpush.bf16.msra.mxu1 %v525_v18 }
  0x4f   : > { %322 = vmatmul.bf16.vlgmr.msra.gmra.mxu0 %v214_v19 }
  0x50   : > { %335 = vmatmul.bf16.vlgmr.msra.gmra.mxu1 %v215_v20 }
  0xcc   : > { %v323_v21 = vpop.f32.mrf.mxu0 }
  0xcd   : > { %v336_v22 = vpop.f32.mrf.mxu1 }
  0xce   : > { %v337_v23 = vadd.f32 %v336_v22, %v323_v21 }
  0xd0   : > { %340 = vst [vmem:[%s177_s17] sm:$0xff] %v337_v23 }
  0xd1   : > { %680 = shalt.err (!%p677_p8)
}
  0xd2   : > { %539 = dma.vmem_to_hbm [thread:$0]  (%p796_p11), %s355_s19, 128, %s357_s25, %s342_s26  }
  0xd4   : > { %v325_v24 = vpop.f32.mrf.mxu0 }
  0xd5   : > { %v338_v25 = vpop.f32.mrf.mxu1 }
  0xd6 PF: > { %s368_s6 = sand.u32 1, %s711_s9   ;;  %p914_p9 = scmp.ge.s32.totalorder %s723_s12, 2 }
  0xd7   : > { %s369_s7 = scalar_lea.sflag [#allocation4], %s368_s6 }
  0xd8   : > { %p550_p10 = pnand %p914_p9, %p800_p12 }
  0xda   : > { %p551_p1 = pneg %p550_p10 }
  0xdc   : > { %706 = dma.done.wait (%p551_p1), %s369_s7, 128  }
  0xdd   : > { %708 = vsyncadd (%p551_p1), %s369_s7, 4294967168  ;;  %p16_p11 = scmp.ge.s32.totalorder %s769_s15, 4   ;;  %s915_s9 = smov %s715_s10 }
  0xde   : > { %s916_s10 = smov %s719_s11  ;;  %s917_s11 = smov %s781_s18 }
  0xdf   : > { %s918_s12 = smov %s769_s15  ;;  %18 = sbr.rel (!%p16_p11) target bundleno = 6 (0x6), region = 78 }
  0xe4   :  { %375 = vsyncpa [#allocation3], 1 }
  0xe5   :  { %377 = vsyncpa [#allocation3 + $0x1], 1 }
  0xe6   :  { %378 = vsyncpa [#allocation6], 1 }
  0xe7   :  { %380 = vsyncpa [#allocation6 + $0x1], 1 }
  0xe8   :  { %381 = vsyncpa [#allocation4], 1 }
  0xe9   :  { %383 = vsyncpa [#allocation4 + $0x1], 1 }

</bundles_post_ra>
